<compile_context>
chip_gen: v6e
topology: v6e:2x2x1
jax: 0.10.0
libtpu: 0.0.40
codegen_flags: <defaults>
</compile_context>

<pallas_src>
import jax
import jax.numpy as jnp
from jax.experimental import pallas as pl
from jax.experimental.pallas import tpu as pltpu


def _channel_attention_kernel(x_ref, w1t_ref, b1_ref, w2t_ref, b2_ref,
                              o_ref, acc_ref):
    # x_ref:   (TILE_N, C, TILE_HW)   w1t_ref: (C, Cr)   b1_ref: (1, Cr)
    # w2t_ref: (Cr, C)                b2_ref:  (1, C)    o_ref:  (TILE_N, 1, C)
    # acc_ref: (TILE_N, C) f32 scratch, persistent across the HW grid axis.
    k = pl.program_id(1)

    @pl.when(k == 0)
    def _init():
        acc_ref[...] = jnp.zeros_like(acc_ref)

    # Accumulate the spatial sum for this HW tile (lane-axis reduce: a handful
    # of VPU adds + one XLU reduce per sublane group — hidden under the x DMA).
    # The 1/(H*W) mean factor is folded into w1t on the host side.
    acc_ref[...] += jnp.sum(x_ref[...], axis=-1)                  # (TILE_N, C)

    @pl.when(k == pl.num_programs(1) - 1)
    def _finalize():
        gap = acc_ref[...]                                        # (TILE_N, C)
        # 1x1 conv #1 (C -> Cr) + bias, ReLU.
        h = jnp.dot(gap, w1t_ref[...],
                    preferred_element_type=jnp.float32) + b1_ref[...]
        h = jnp.maximum(h, 0.0)
        # 1x1 conv #2 (Cr -> C) + bias.
        out = jnp.dot(h, w2t_ref[...],
                      preferred_element_type=jnp.float32) + b2_ref[...]
        o_ref[...] = out[:, None, :].astype(o_ref.dtype)          # (TILE_N,1,C)


def _choose_tile_hw(hw, tile_n, c, itemsize, vmem_budget_bytes=8 * 1024 * 1024):
    """Largest lane-aligned tile of the spatial axis that divides HW and whose
    double-buffered x block stays within a conservative VMEM budget."""
    if hw % 128 != 0:
        return hw  # a full-extent block is always a legal block shape
    candidates = [t for t in range(128, hw + 1, 128) if hw % t == 0]
    for t in reversed(candidates):
        if 2 * tile_n * c * t * itemsize <= vmem_budget_bytes:
            return t
    return candidates[0]


def channel_attention(x, w1, b1, w2, b2, *, tile_hw=None):
    """x: (N, C, H, W) f32; w1: (Cr, C, 1, 1); b1: (Cr,); w2: (C, Cr, 1, 1);
    b2: (C,).  Returns (N, C, 1, 1), matching the PyTorch module."""
    N, C, H, W = x.shape
    Cr = w1.shape[0]
    HW = H * W

    TILE_N = 1
    if tile_hw is None:
        tile_hw = _choose_tile_hw(HW, TILE_N, C, x.dtype.itemsize)
    assert HW % tile_hw == 0, "tile_hw must divide H*W"
    n_hw_tiles = HW // tile_hw

    # Host-side glue: flatten spatial, pre-transpose 1x1-conv weights into
    # matmul form, fold the mean normalization into the first weight.
    x_flat = x.reshape(N, C, HW)
    w1t = (w1.reshape(Cr, C).T / jnp.float32(HW)).astype(jnp.float32)  # (C, Cr)
    w2t = w2.reshape(C, Cr).T.astype(jnp.float32)                      # (Cr, C)
    b1r = b1.reshape(1, Cr).astype(jnp.float32)
    b2r = b2.reshape(1, C).astype(jnp.float32)

    bytes_accessed = (N * C * HW + C * Cr * 2 + Cr + C + N * C) * 4
    cost = pl.CostEstimate(
        flops=N * C * HW + 4 * N * C * Cr,   # spatial sum + two tiny matmuls
        transcendentals=0,
        bytes_accessed=bytes_accessed,
    )

    out = pl.pallas_call(
        _channel_attention_kernel,
        out_shape=jax.ShapeDtypeStruct((N, 1, C), x.dtype),
        grid_spec=pltpu.PrefetchScalarGridSpec(
            num_scalar_prefetch=0,
            grid=(N // TILE_N, n_hw_tiles),
            in_specs=[
                pl.BlockSpec((TILE_N, C, tile_hw), lambda b, k: (b, 0, k)),
                pl.BlockSpec((C, Cr), lambda b, k: (0, 0)),
                pl.BlockSpec((1, Cr), lambda b, k: (0, 0)),
                pl.BlockSpec((Cr, C), lambda b, k: (0, 0)),
                pl.BlockSpec((1, C), lambda b, k: (0, 0)),
            ],
            out_specs=pl.BlockSpec((TILE_N, 1, C), lambda b, k: (b, 0, 0)),
            scratch_shapes=[pltpu.VMEM((TILE_N, C), jnp.float32)],
        ),
        compiler_params=pltpu.CompilerParams(
            dimension_semantics=("parallel", "arbitrary"),
            vmem_limit_bytes=32 * 1024 * 1024,
        ),
        cost_estimate=cost,
    )(x_flat, w1t, b1r, w2t, b2r)

    return out.reshape(N, C, 1, 1)


if __name__ == "__main__":
    # Module config: dim=32, reduction=8 -> hidden Cr = 4.
    N, C, H, W = 2, 32, 16, 16
    reduction = 8
    Cr = C // reduction

    key = jax.random.PRNGKey(0)
    kx, kw1, kb1, kw2, kb2 = jax.random.split(key, 5)

    x = jax.random.normal(kx, (N, C, H, W), dtype=jnp.float32)
    # Conv2d(dim, dim//r, 1, bias=True) / Conv2d(dim//r, dim, 1, bias=True)
    w1 = jax.random.normal(kw1, (Cr, C, 1, 1), dtype=jnp.float32) * 0.1
    b1 = jax.random.normal(kb1, (Cr,), dtype=jnp.float32) * 0.1
    w2 = jax.random.normal(kw2, (C, Cr, 1, 1), dtype=jnp.float32) * 0.1
    b2 = jax.random.normal(kb2, (C,), dtype=jnp.float32) * 0.1

    # tile_hw=128 forces a 2-step HW reduction so the accumulator/init/finalize
    # path is exercised even at this toy size.
    out = channel_attention(x, w1, b1, w2, b2, tile_hw=128)
    out = jax.block_until_ready(out)

    # Pure-JAX reference (same math, outside Pallas).
    gap = jnp.mean(x, axis=(2, 3))                                   # (N, C)
    h = jnp.maximum(gap @ w1.reshape(Cr, C).T + b1, 0.0)             # (N, Cr)
    ref = (h @ w2.reshape(C, Cr).T + b2).reshape(N, C, 1, 1)
    assert out.shape == (N, C, 1, 1)
    assert jnp.allclose(out, ref, atol=1e-5, rtol=1e-5)

    print("KERNEL_OK")
</pallas_src>

<mosaic_0001>
module attributes {stable_mosaic.version = 11 : i64} {
  func.func @_channel_attention_kernel(%arg0: i32, %arg1: i32, %arg2: memref<1x32x128xf32, #tpu.memory_space<vmem>>, %arg3: memref<32x4xf32, #tpu.memory_space<vmem>>, %arg4: memref<1x4xf32, #tpu.memory_space<vmem>>, %arg5: memref<4x32xf32, #tpu.memory_space<vmem>>, %arg6: memref<1x32xf32, #tpu.memory_space<vmem>>, %arg7: memref<1x1x32xf32, #tpu.memory_space<vmem>>, %arg8: memref<1x32xf32, #tpu.memory_space<vmem>>) attributes {dimension_semantics = [#tpu.dimension_semantics<parallel>, #tpu.dimension_semantics<arbitrary>], iteration_bounds = array<i64: 2, 2>, scalar_prefetch = 0 : i64, scratch_operands = 1 : i64, tpu.core_type = #tpu.core_type<tc>, window_params = [{transform_indices = @transform_0, window_bounds = array<i64: 1, 32, 128>}, {pipeline_mode = #tpu.pipeline_mode<synchronous>, transform_indices = @transform_1, window_bounds = array<i64: 32, 4>}, {pipeline_mode = #tpu.pipeline_mode<synchronous>, transform_indices = @transform_2, window_bounds = array<i64: 1, 4>}, {pipeline_mode = #tpu.pipeline_mode<synchronous>, transform_indices = @transform_3, window_bounds = array<i64: 4, 32>}, {pipeline_mode = #tpu.pipeline_mode<synchronous>, transform_indices = @transform_4, window_bounds = array<i64: 1, 32>}, {transform_indices = @transform_5, window_bounds = array<i64: 1, 1, 32>}]} {
    %c0_i32 = arith.constant 0 : i32
    %0 = arith.cmpi eq, %arg1, %c0_i32 : i32
    %1 = arith.extui %0 : i1 to i32
    %c0_i32_0 = arith.constant 0 : i32
    %2 = arith.cmpi ne, %1, %c0_i32_0 : i32
    scf.if %2 {
      %cst_8 = arith.constant 0.000000e+00 : f32
      %11 = vector.broadcast %cst_8 : f32 to vector<1x32xf32>
      %c0_9 = arith.constant 0 : index
      %c0_10 = arith.constant 0 : index
      %12 = vector.load %arg8[%c0_9, %c0_10] : memref<1x32xf32, #tpu.memory_space<vmem>>, vector<1x32xf32>
      tpu.vector_store %arg8[%c0_9, %c0_10], %11 {strides = array<i32>} : memref<1x32xf32, #tpu.memory_space<vmem>>, vector<1x32xf32>,
    } else {
    }
    %c0 = arith.constant 0 : index
    %c0_1 = arith.constant 0 : index
    %3 = vector.load %arg8[%c0, %c0_1] : memref<1x32xf32, #tpu.memory_space<vmem>>, vector<1x32xf32>
    %c0_2 = arith.constant 0 : index
    %c0_3 = arith.constant 0 : index
    %c0_4 = arith.constant 0 : index
    %4 = vector.load %arg2[%c0_2, %c0_3, %c0_4] : memref<1x32x128xf32, #tpu.memory_space<vmem>>, vector<1x32x128xf32>
    %cst = arith.constant dense<0.000000e+00> : vector<1x32xf32>
    %5 = vector.multi_reduction <add>, %4, %cst [2] : vector<1x32x128xf32> to vector<1x32xf32>
    %6 = arith.addf %3, %5 : vector<1x32xf32>
    %c0_5 = arith.constant 0 : index
    %c0_6 = arith.constant 0 : index
    %7 = vector.load %arg8[%c0_5, %c0_6] : memref<1x32xf32, #tpu.memory_space<vmem>>, vector<1x32xf32>
    tpu.vector_store %arg8[%c0_5, %c0_6], %6 {strides = array<i32>} : memref<1x32xf32, #tpu.memory_space<vmem>>, vector<1x32xf32>,
    %c1_i32 = arith.constant 1 : i32
    %8 = arith.cmpi eq, %arg1, %c1_i32 : i32
    %9 = arith.extui %8 : i1 to i32
    %c0_i32_7 = arith.constant 0 : i32
    %10 = arith.cmpi ne, %9, %c0_i32_7 : i32
    scf.if %10 {
      %c0_8 = arith.constant 0 : index
      %c0_9 = arith.constant 0 : index
      %11 = vector.load %arg8[%c0_8, %c0_9] : memref<1x32xf32, #tpu.memory_space<vmem>>, vector<1x32xf32>
      %c0_10 = arith.constant 0 : index
      %c0_11 = arith.constant 0 : index
      %12 = vector.load %arg3[%c0_10, %c0_11] : memref<32x4xf32, #tpu.memory_space<vmem>>, vector<32x4xf32>
      %cst_12 = arith.constant dense<0.000000e+00> : vector<1x4xf32>
      %13 = tpu.matmul %11, %12, %cst_12 {dimension_numbers = #tpu.dot_dimension_numbers<[1], [0], [0], [1], [0, 0, 1, 1], [], []>} : vector<1x32xf32>, vector<32x4xf32>, vector<1x4xf32> -> vector<1x4xf32>
      %c0_13 = arith.constant 0 : index
      %c0_14 = arith.constant 0 : index
      %14 = vector.load %arg4[%c0_13, %c0_14] : memref<1x4xf32, #tpu.memory_space<vmem>>, vector<1x4xf32>
      %15 = arith.addf %13, %14 : vector<1x4xf32>
      %cst_15 = arith.constant 0.000000e+00 : f32
      %16 = vector.broadcast %cst_15 : f32 to vector<1x4xf32>
      %17 = arith.maximumf %15, %16 : vector<1x4xf32>
      %c0_16 = arith.constant 0 : index
      %c0_17 = arith.constant 0 : index
      %18 = vector.load %arg5[%c0_16, %c0_17] : memref<4x32xf32, #tpu.memory_space<vmem>>, vector<4x32xf32>
      %cst_18 = arith.constant dense<0.000000e+00> : vector<1x32xf32>
      %19 = tpu.matmul %17, %18, %cst_18 {dimension_numbers = #tpu.dot_dimension_numbers<[1], [0], [0], [1], [0, 0, 1, 1], [], []>} : vector<1x4xf32>, vector<4x32xf32>, vector<1x32xf32> -> vector<1x32xf32>
      %c0_19 = arith.constant 0 : index
      %c0_20 = arith.constant 0 : index
      %20 = vector.load %arg6[%c0_19, %c0_20] : memref<1x32xf32, #tpu.memory_space<vmem>>, vector<1x32xf32>
      %21 = arith.addf %19, %20 : vector<1x32xf32>
      %22 = vector.shape_cast %21 : vector<1x32xf32> to vector<1x1x32xf32>
      %c0_21 = arith.constant 0 : index
      %c0_22 = arith.constant 0 : index
      %c0_23 = arith.constant 0 : index
      %23 = vector.load %arg7[%c0_21, %c0_22, %c0_23] : memref<1x1x32xf32, #tpu.memory_space<vmem>>, vector<1x1x32xf32>
      tpu.vector_store %arg7[%c0_21, %c0_22, %c0_23], %22 {strides = array<i32>} : memref<1x1x32xf32, #tpu.memory_space<vmem>>, vector<1x1x32xf32>,
    } else {
    }
    return
  }
  func.func @transform_0(%arg0: i32, %arg1: i32) -> (i32, i32, i32) {
    %c0_i32 = arith.constant 0 : i32
    %c0_i32_0 = arith.constant 0 : i32
    return %arg0, %c0_i32, %arg1 : i32, i32, i32
  }
  func.func @transform_1(%arg0: i32, %arg1: i32) -> (i32, i32) {
    %c0_i32 = arith.constant 0 : i32
    %c0_i32_0 = arith.constant 0 : i32
    %c0_i32_1 = arith.constant 0 : i32
    return %c0_i32, %c0_i32_0 : i32, i32
  }
  func.func @transform_2(%arg0: i32, %arg1: i32) -> (i32, i32) {
    %c0_i32 = arith.constant 0 : i32
    %c0_i32_0 = arith.constant 0 : i32
    %c0_i32_1 = arith.constant 0 : i32
    return %c0_i32, %c0_i32_0 : i32, i32
  }
  func.func @transform_3(%arg0: i32, %arg1: i32) -> (i32, i32) {
    %c0_i32 = arith.constant 0 : i32
    %c0_i32_0 = arith.constant 0 : i32
    %c0_i32_1 = arith.constant 0 : i32
    return %c0_i32, %c0_i32_0 : i32, i32
  }
  func.func @transform_4(%arg0: i32, %arg1: i32) -> (i32, i32) {
    %c0_i32 = arith.constant 0 : i32
    %c0_i32_0 = arith.constant 0 : i32
    %c0_i32_1 = arith.constant 0 : i32
    return %c0_i32, %c0_i32_0 : i32, i32
  }
  func.func @transform_5(%arg0: i32, %arg1: i32) -> (i32, i32, i32) {
    %c0_i32 = arith.constant 0 : i32
    %c0_i32_0 = arith.constant 0 : i32
    %c0_i32_1 = arith.constant 0 : i32
    return %arg0, %c0_i32, %c0_i32_0 : i32, i32, i32
  }
}

</mosaic_0001>

<bundles_post_ra>
// kernel: tpu_custom_call.1
= control target key start
LH: loop header
LB: loop body
LE: loop exit
PB: predicated region body
PF: predicated region fallthrough
CT: control target
= control target key end

     0   :  { %s1563_s0 = inlined_call_operand.hbm [shape: f32[2,32,256], index: 0, kind: input, shape index: {}]   ;;  %s1564_s1 = inlined_call_operand.vmem [shape: f32[32,4], index: 1, kind: input, shape index: {}]   ;;  %s1565_s2 = inlined_call_operand.vmem [shape: f32[1,4], index: 2, kind: input, shape index: {}]   ;;  %s1566_s3 = inlined_call_operand.vmem [shape: f32[4,32], index: 3, kind: input, shape index: {}]   ;;  %s1567_s4 = inlined_call_operand.vmem [shape: f32[1,32], index: 4, kind: input, shape index: {}]   ;;  %s1568_s5 = inlined_call_operand.hbm [shape: f32[2,1,32], index: 5, kind: output, shape index: {}]  }
   0x1   :  { %1575 = sst [smem:[#allocation14_spill]] %s1568_s5 }
   0x2   :  { %10 = vsyncpa [#allocation4], 0 }
   0x3   :  { %12 = vsyncpa [#allocation4 + $0x1], 0 }
   0x4   :  { %13 = vsyncpa [#allocation5], 0 }
   0x5   :  { %15 = vsyncpa [#allocation5 + $0x1], 0  ;;  %s1261_s18 = smov 0   ;;  %s1263_s19 = smov 0  }
   0x6   :  { %s1265_s20 = smov 0   ;;  %s1267_s21 = smov 0  }
   0x7   :  { %s1269_s22 = smov 0   ;;  %s1271_s23 = smov 0  }
   0x8   :  { %s1273_s24 = smov 0   ;;  %s1275_s25 = smov 0  }
   0x9   :  { %s1277_s26 = smov 0   ;;  %s1279_s27 = smov 0  }
   0xa   :  { %s1281_s28 = smov 0  }
   0xb LB: > { %1576 = sst [smem:[#allocation9_spill]] %s1199_s23  ;;  %s919_s29 = sadd.s32 4294967295, %s1219_s28   ;;  %s1219_s28 = sphi %s1281_s28, %s21_s28   ;;  %s1215_s27 = sphi %s1279_s27, %s1600_s27   ;;  %s1211_s26 = sphi %s1277_s26, %s1599_s26   ;;  %s1207_s25 = sphi %s1275_s25, %s1598_s25   ;;  %s1203_s24 = sphi %s1273_s24, %s1597_s24   ;;  %s1199_s23 = sphi %s1271_s23, %s1589_s23   ;;  %s1195_s22 = sphi %s1269_s22, %s1596_s22   ;;  %s1191_s21 = sphi %s1267_s21, %s1595_s21   ;;  %s1187_s20 = sphi %s1265_s20, %s1594_s20   ;;  %s1183_s19 = sphi %s1263_s19, %s1593_s19   ;;  %s1179_s18 = sphi %s1261_s18, %s1592_s18  }
   0xc   : > { %s920_s30 = sadd.s32 4294967294, %s1219_s28   ;;  %s30_s6 = sadd.s32 1, %s1211_s26 }
   0xd   : > { %s33_s7 = sadd.s32 1, %s1215_s27  ;;  %p31_p0 = scmp.ge.s32.totalorder %s30_s6, 2 }
   0xe   : > { %s42_s8 = sadd.s32 1, %s1199_s23  ;;  %p49_p1 = scmp.ne.s32.totalorder %s1199_s23, %s1195_s22 }
   0xf   : > { %p50_p2 = scmp.eq.s32.totalorder %s1219_s28, 0  ;;  %s1602_s6 = smov (%p31_p0, %s30_s6), 0 }
  0x10   : > { %1577 = sst [smem:[#allocation10_spill]] %s1602_s6  ;;  %s1604_s7 = smov (!%p31_p0, %s33_s7), %s1215_s27 }
  0x11   : > { %s38_s9 = ssub.s32 %s1211_s26, %s1602_s6  ;;  %p1327_p3 = por %p50_p2, %p49_p1 }
  0x12   : > { %p35_p4 = scmp.ge.s32.totalorder %s1604_s7, 2  ;;  %p55_p5 = scmp.ne.s32.totalorder %s1195_s22, %s1191_s21 }
  0x13   : > { %p56_p6 = scmp.eq.s32.totalorder %s919_s29, 0  ;;  %s152_s11 = sadd.s32 1, %s1187_s20 }
  0x14   : > { %s1606_s7 = smov (%p35_p4, %s1604_s7), 0  ;;  %p162_p8 = scmp.ne.s32.totalorder %s1187_s20, %s1183_s19 }
  0x15   : > { %1579 = sst [smem:[#allocation11_spill]] %s1606_s7  ;;  %p1335_p7 = por %p56_p6, %p55_p5 }
  0x16   : > { %s37_s13 = ssub.s32 %s1215_s27, %s1606_s7  ;;  %p163_p9 = scmp.eq.s32.totalorder %s919_s29, 3 }
  0x17   : > { %s39_s14 = sor.u32 %s38_s9, %s37_s13  ;;  %p150_p10 = scmp.eq.s32.totalorder %s37_s13, 0 }
  0x18   : > { %p40_p11 = scmp.eq.s32.totalorder %s39_s14, 0  ;;  %p1343_p12 = por %p163_p9, %p162_p8 }
  0x19   : > { %s1348_s16 = scalar_select %p150_p10, %s1187_s20, %s152_s11  }
  0x1a   : > { %s1581_s15 = scalar_select %p1343_p12, 1, 0 }
  0x1b   : > { %s1351_s17 = scalar_select %p40_p11, %s1199_s23, %s42_s8  }
  0x1c   : > { %1582 = sst [smem:[#allocation12_spill]] %s1581_s15  ;;  %p168_p13 = scmp.ne.s32.totalorder %s1183_s19, %s1179_s18 }
  0x1d   : > { %1583 = sst [smem:[#allocation13_spill]] %s1351_s17  ;;  %p169_p0 = scmp.eq.s32.totalorder %s920_s30, 3 }
  0x1e   : > { %p971_p1 = scmp.lt.s32.totalorder %s1219_s28, 4  ;;  %s201_s29 = sand.u32 1, %s1199_s23  }
  0x1f   : > { %p1356_p2 = por %p169_p0, %p168_p13  ;;  %s923_s9 = sshll.u32 %s201_s29, 5 }
  0x20   : > { %s924_s13 = sshll.u32 %s1215_s27, 3  ;;  %s205_s7 = scalar_lea.vmem [#allocation3], %s923_s9 }
  0x21   : > { %s210_s14 = sadd.s32 %s1211_s26, %s924_s13  ;;  %s213_s6 = sshll.u32 %s205_s7, 4  ;;  %s214_s6 = int_to_ptr.vmem [resolvable:$true] %s213_s6 }
  0x22   : > { %s925_s5 = sshll.u32 %s210_s14, 7  ;;  %p1368_p4 = pnand %p971_p1, %p1327_p3 }
  0x23   : > { %s212_s8 = scalar_lea.hbm %s1563_s0, %s925_s5  ;;  %s202_s17 = scalar_lea.sflag [#allocation4], %s201_s29 }
  0x24   : > { %p1073_p5 = pneg %p1368_p4  ;;  %s1084_s23 = scalar_lea.vmem %s214_s6, 512 }
  0x25   : > { %p1085_p6 = scmp.ne.s32.totalorder %s214_s6, %s1084_s23  ;;  %s1221_s7 = smov [#allocation3]  }
  0x26   : > { %s1089_s9 = sshll.u32 %s1221_s7, 4  ;;  %s1090_s9 = int_to_ptr.vmem [resolvable:$false] %s1089_s9 }
  0x27   : > { %p1087_p8 = pnand %p1085_p6, %p1073_p5  ;;  %s1091_s13 = scalar_lea.vmem %s1090_s9, 1024 }
  0x28   : > { %p1092_p10 = scmp.lt.s32.totalorder %s214_s6, %s1090_s9  ;;  %p1093_p11 = scmp.lt.s32.totalorder %s1091_s13, %s1084_s23 }
  0x29   : > { %p1088_p9 = pneg %p1087_p8 }
  0x2a   : > { %p1094_p13 = por %p1093_p11, %p1092_p10 }
  0x2c   : > { %p1095_p0 = pnand %p1094_p13, %p1088_p9 }
  0x2e   : > { %1098 = shalt.err (!%p1095_p0)
}
  0x2f   : > { %s1222_s5 = smov 256   ;;  %s1223_s10 = smov 128  }
  0x30   : > { %s1224_s15 = smov 8   ;;  %p926_p3 = scmp.ge.s32.totalorder %s1219_s28, 1 }
  0x31   : > { %966 = dma.hbm_to_vmem [thread:$0]  (!%p1368_p4), %s212_s8, 512, %s214_s6, %s202_s17, %s1222_s5, %s1223_s10, %s1224_s15  }
  0x32   : > { %p221_p1 = scmp.lt.s32.totalorder %s1219_s28, 5 }
  0x34   : > { %p222_p5 = pnand %p926_p3, %p221_p1 }
  0x35   : > { %s227_s29 = sand.u32 (!%p222_p5), 1, %s1195_s22  }
  0x36   : > { %225 = sbr.rel (%p222_p5) target bundleno = 795 (0x31b), region = 40  ;;  %s927_s14 = sshll.u32 (!%p222_p5), %s227_s29, 5 }
  0x37   : > { %s228_s23 = scalar_lea.sflag (!%p222_p5), [#allocation4], %s227_s29  ;;  %s231_s11 = scalar_lea.vmem (!%p222_p5), [#allocation3], %s927_s14 }
  0x3b   : > { %1170 = dma.done.wait (%p1335_p7), %s228_s23, 512  }
  0x3c   : > { %1172 = vsyncadd (%p1335_p7), %s228_s23, 4294966784  ;;  %s255_s7 = sand.u32 1, %s1183_s19   ;;  %p928_p4 = scmp.ne.s32.totalorder %s1203_s24, 0 }
  0x3d   : > { %s1386_s6 = scalar_lea.vmem [#allocation6], %s255_s7 }
  0x3e   : > { %260 = sbr.rel (%p928_p4) target bundleno = 69 (0x45), region = 48 }
  0x43   : > { %vm261_vm0 = vcmask 253952   ;;  %v1225_v0 = vmov 0.0  }
  0x44   : > { %262 = vst.msk [vmem:[#allocation2] sm:$0x1] %vm261_vm0, %v1225_v0 }
  0x45 PF: > { %v264_v1 = vld [vmem:[%s231_s11] sm:$0xff]  ;;  %v266_v2 = vld [vmem:[%s231_s11 + $0x10] sm:$0xff]  ;;  %v265_v3 = vld [vmem:[%s231_s11 + $0x8] sm:$0xff]  ;;  %v1226_v5 = vmov 0   ;;  %v280_v6 = vlaneseq  ;;  %v1227_v7 = vmov 1966171168  }
  0x46   : > { %268 = vadd.xlane.f32.xlu0 %v264_v1  ;;  %272 = vadd.xlane.f32.xlu1 %v266_v2  ;;  %v267_v4 = vld [vmem:[%s231_s11 + $0x18] sm:$0xff]  ;;  %v413_v8 = vunpack.c.l.s4 %v1227_v7  ;;  %vm627_vm1 = vcmask 130112   ;;  %vm634_vm2 = vcmask 195712   ;;  %vm641_vm3 = vcmask 261312   ;;  %p929_p7 = scmp.ne.s32.totalorder %s1203_s24, 1 }
  0x47   : > { %1069 = vset.pattern.permute.xlu0 %v1226_v5  ;;  %1070 = vset.pattern.permute.xlu1 %v1226_v5  ;;  %v1390_v9 = vshrl.u32 %v280_v6, 7  ;;  %vm659_vm4 = vcmask 253952  }
  0x48   : > { %v414_v10 = vunpack.c.0.s8 %v413_v8 }
  0x49   : > { %v1393_v11 = vsub.s32 0, %v1390_v9  ;;  %v1396_v12 = vsub.s32 1, %v1390_v9  ;;  %v1399_v13 = vsub.s32 2, %v1390_v9  ;;  %v1402_v14 = vsub.s32 3, %v1390_v9 }
  0x4a   : > { %270 = vadd.xlane.f32.xlu0 %v265_v3  ;;  %274 = vadd.xlane.f32.xlu1 %v267_v4  ;;  %v1405_v15 = vsub.s32 4, %v1390_v9  ;;  %v1408_v16 = vsub.s32 5, %v1390_v9  ;;  %v1411_v17 = vsub.s32 6, %v1390_v9  ;;  %v1414_v18 = vsub.s32 7, %v1390_v9 }
  0x4b   : > { %v1417_v21 = vsub.s32 %v414_v10, %v1390_v9 }
  0xcf   : > { %v269_v19 = vpop.xlane.xlu0 %268  ;;  %v273_v20 = vpop.xlane.xlu1 %272 }
  0xd0   : > { %v283_v22 = vrot.slane %v269_v19, %v1393_v11  ;;  %v287_v23 = vrot.slane %v269_v19, %v1396_v12  ;;  %v291_v24 = vrot.slane %v269_v19, %v1399_v13  ;;  %v295_v25 = vrot.slane %v269_v19, %v1402_v14 }
  0xd1   : > { %v299_v26 = vrot.slane %v269_v19, %v1405_v15  ;;  %v303_v27 = vrot.slane %v269_v19, %v1408_v16  ;;  %v307_v28 = vrot.slane %v269_v19, %v1411_v17  ;;  %v311_v29 = vrot.slane %v269_v19, %v1414_v18 }
  0xd2   : > { %v408_v30 = vcombine.low %v283_v22, %v287_v23  ;;  %v409_v31 = vcombine.low %v291_v24, %v295_v25  ;;  %v347_v32 = vrot.slane %v273_v20, %v1393_v11  ;;  %v351_v33 = vrot.slane %v273_v20, %v1396_v12 }
  0xd3   : > { %v271_v34 = vpop.xlane.xlu0 %270  ;;  %v410_v35 = vcombine.low %v299_v26, %v303_v27  ;;  %v411_v36 = vcombine.low %v307_v28, %v311_v29  ;;  %v355_v37 = vrot.slane %v273_v20, %v1399_v13  ;;  %v359_v38 = vrot.slane %v273_v20, %v1402_v14  ;;  %v275_v59 = vpop.xlane.xlu1 %274 }
  0xd4   : > { %v418_v39 = vrot.slane %v408_v30, %v1417_v21  ;;  %v425_v40 = vrot.slane %v409_v31, %v1417_v21  ;;  %v315_v41 = vrot.slane %v271_v34, %v1393_v11  ;;  %v319_v42 = vrot.slane %v271_v34, %v1396_v12 }
  0xd5   : > { %v432_v43 = vrot.slane %v410_v35, %v1417_v21  ;;  %v439_v44 = vrot.slane %v411_v36, %v1417_v21  ;;  %v323_v45 = vrot.slane %v271_v34, %v1399_v13  ;;  %v327_v46 = vrot.slane %v271_v34, %v1402_v14 }
  0xd6   : > { %v440_v47 = vcombine.low %v418_v39, %v425_v40  ;;  %v331_v48 = vrot.slane %v271_v34, %v1405_v15  ;;  %v335_v49 = vrot.slane %v271_v34, %v1408_v16  ;;  %v339_v50 = vrot.slane %v271_v34, %v1411_v17 }
  0xd7   : > { %v441_v51 = vcombine.low %v432_v43, %v439_v44  ;;  %v343_v52 = vrot.slane %v271_v34, %v1414_v18  ;;  %v457_v53 = vcombine.low %v315_v41, %v319_v42  ;;  %v458_v54 = vcombine.low %v323_v45, %v327_v46 }
  0xd8   : > { %v448_v55 = vrot.slane %v440_v47, %v1417_v21  ;;  %v459_v56 = vcombine.low %v331_v48, %v335_v49  ;;  %v363_v57 = vrot.slane %v273_v20, %v1405_v15  ;;  %v367_v58 = vrot.slane %v273_v20, %v1408_v16 }
  0xd9   : > { %v455_v60 = vrot.slane %v441_v51, %v1417_v21  ;;  %v460_v61 = vcombine.low %v339_v50, %v343_v52  ;;  %v467_v62 = vrot.slane %v457_v53, %v1417_v21  ;;  %v474_v63 = vrot.slane %v458_v54, %v1417_v21 }
  0xda   : > { %v481_v0 = vrot.slane %v459_v56, %v1417_v21  ;;  %v371_v1 = vrot.slane %v273_v20, %v1411_v17  ;;  %v375_v2 = vrot.slane %v273_v20, %v1414_v18  ;;  %v506_v3 = vcombine.low %v347_v32, %v351_v33 }
  0xdb   : > { %v456_v4 = vcombine.low %v448_v55, %v455_v60  ;;  %v488_v5 = vrot.slane %v460_v61, %v1417_v21  ;;  %v489_v7 = vcombine.low %v467_v62, %v474_v63  ;;  %v507_v8 = vcombine.low %v355_v37, %v359_v38 }
  0xdc   : > { %v508_v10 = vcombine.low %v363_v57, %v367_v58  ;;  %v509_v19 = vcombine.low %v371_v1, %v375_v2  ;;  %v516_v22 = vrot.slane %v506_v3, %v1417_v21  ;;  %v379_v23 = vrot.slane %v275_v59, %v1393_v11  ;;  %v263_v2 = vld [vmem:[#allocation2] sm:$0x1] }
  0xdd   : > { %605 = vperm.xlu0 %1069, %v456_v4   ;;  %v490_v24 = vcombine.low %v481_v0, %v488_v5  ;;  %v497_v25 = vrot.slane %v489_v7, %v1417_v21  ;;  %v523_v26 = vrot.slane %v507_v8, %v1417_v21  ;;  %v383_v20 = vrot.slane %v275_v59, %v1396_v12 }
  0xde   : > { %v530_v27 = vrot.slane %v508_v10, %v1417_v21  ;;  %v537_v28 = vrot.slane %v509_v19, %v1417_v21  ;;  %v387_v29 = vrot.slane %v275_v59, %v1399_v13  ;;  %v391_v30 = vrot.slane %v275_v59, %v1402_v14 }
  0xdf   : > { %v504_v31 = vrot.slane %v490_v24, %v1417_v21  ;;  %v538_v32 = vcombine.low %v516_v22, %v523_v26  ;;  %v395_v11 = vrot.slane %v275_v59, %v1405_v15  ;;  %v399_v33 = vrot.slane %v275_v59, %v1408_v16 }
  0xe0   : > { %v539_v34 = vcombine.low %v530_v27, %v537_v28  ;;  %v403_v35 = vrot.slane %v275_v59, %v1411_v17  ;;  %v407_v12 = vrot.slane %v275_v59, %v1414_v18  ;;  %v555_v36 = vcombine.low %v379_v23, %v383_v20 }
  0xe1   : > { %v505_v37 = vcombine.low %v497_v25, %v504_v31  ;;  %v546_v38 = vrot.slane %v538_v32, %v1417_v21  ;;  %v556_v39 = vcombine.low %v387_v29, %v391_v30  ;;  %v557_v13 = vcombine.low %v395_v11, %v399_v33 }
  0xe2   : > { %v553_v14 = vrot.slane %v539_v34, %v1417_v21  ;;  %v558_v40 = vcombine.low %v403_v35, %v407_v12  ;;  %v565_v41 = vrot.slane %v555_v36, %v1417_v21  ;;  %v617_v47 = vand.u32 127, %v280_v6 }
  0xe3   : > { %608 = vperm.xlu1 %1070, %v505_v37   ;;  %v572_v15 = vrot.slane %v556_v39, %v1417_v21  ;;  %v579_v16 = vrot.slane %v557_v13, %v1417_v21 }
  0xe4   : > { %v554_v42 = vcombine.low %v546_v38, %v553_v14  ;;  %v586_v17 = vrot.slane %v558_v40, %v1417_v21  ;;  %v622_v48 = vadd.s32 4294967288, %v617_v47  ;;  %v629_v49 = vadd.s32 4294967280, %v617_v47 }
  0xe5   : > { %v587_v18 = vcombine.low %v565_v41, %v572_v15  ;;  %v636_v52 = vadd.s32 4294967272, %v617_v47  ;;  %v620_v54 = vsub.s32 %v617_v47, %v1390_v9 }
  0xe6   : > { %v588_v43 = vcombine.low %v579_v16, %v586_v17  ;;  %v625_v51 = vsub.s32 %v622_v48, %v1390_v9  ;;  %v632_v53 = vsub.s32 %v629_v49, %v1390_v9 }
  0xe7   : > { %611 = vperm.xlu1 %1070, %v554_v42   ;;  %v595_v44 = vrot.slane %v587_v18, %v1417_v21  ;;  %v639_v58 = vsub.s32 %v636_v52, %v1390_v9 }
  0xe8   : > { %v602_v45 = vrot.slane %v588_v43, %v1417_v21 }
  0xea   : > { %v603_v46 = vcombine.low %v595_v44, %v602_v45 }
  0xec   : > { %614 = vperm.xlu1 %1070, %v603_v46  }
 0x158   : > { %v606_v56 = vpop.permute.xlu0 %605 }
 0x159   : > { %v621_v60 = vrot.slane %v606_v56, %v620_v54 }
 0x15e   : > { %v609_v50 = vpop.permute.xlu1 %608 }
 0x15f   : > { %v626_v57 = vrot.slane %v609_v50, %v625_v51 }
 0x161   : > { %v628_v61 = vsel %vm627_vm1, %v626_v57, %v621_v60 }
 0x162   : > { %v612_v55 = vpop.permute.xlu1 %611 }
 0x163   : > { %v633_v59 = vrot.slane %v612_v55, %v632_v53 }
 0x165   : > { %v635_v63 = vsel %vm634_vm2, %v633_v59, %v628_v61 }
 0x167   : > { %v615_v6 = vpop.permute.xlu1 %614 }
 0x168   : > { %v640_v62 = vrot.slane %v615_v6, %v639_v58 }
 0x16a   : > { %v642_v0 = vsel %vm641_vm3, %v640_v62, %v635_v63 }
 0x16b   : > { %v649_v1 = vrot.slane %v642_v0, %v1417_v21 }
 0x16d   : > { %v656_v3 = vrot.slane %v649_v1, %v1417_v21  ;;  %664 = sbr.rel (%p929_p7) target bundleno = 772 (0x304), region = 52 }
 0x16f   : > { %v658_v4 = vadd.f32 %v656_v3, %v263_v2 }
 0x171   : > { %660 = vst.msk [vmem:[#allocation2] sm:$0x1] %vm659_vm4, %v658_v4 }
 0x172   : > { %v669_v9 = vld [vmem:[%s1564_s1 + $0x18] sm:$0xff]  ;;  %v1228_v5 = vmov 0.0   ;;  %v668_v7 = vld [vmem:[%s1564_s1 + $0x10] sm:$0xff]  ;;  %vm1229_vm5 = vmmov 0   ;;  %v667_v21 = vld [vmem:[%s1564_s1 + $0x8] sm:$0xff]  ;;  %vm671_vm6 = vcmask 261120  }
 0x173   : > { %943 = vmatprep.subr.mxu0 %v1228_v5  ;;  %951 = vmatprep.mubr.msk.f32.mxu0 %vm1229_vm5, %v1228_v5  ;;  %v666_v8 = vld [vmem:[%s1564_s1] sm:$0xff]  ;;  %vm752_vm7 = vcmask 1043456   ;;  %vm748_vm8 = vcmask 31744  }
 0x174   : > { %944 = vmatpush3.msra.mxu0 %v669_v9  ;;  %954 = vmatprep.subr.mxu1 %v1228_v5  ;;  %v746_v19 = vld [vmem:[%s1566_s3] sm:$0xf] }
 0x175   : > { %945 = vmatprep.subr.mxu0 %v1228_v5  ;;  %956 = vmatprep.mubr.msk.f32.mxu1 %vm1229_vm5, %v1228_v5  ;;  %v670_v22 = vld [vmem:[%s1565_s2] sm:$0x1] }
 0x176   : > { %946 = vmatpush3.msra.mxu0 %v668_v7  ;;  %955 = vmatpush3.msk.msra.mxu1 %vm752_vm7, %v746_v19  ;;  %v747_v20 = vld [vmem:[%s1567_s4] sm:$0x1] }
 0x177   : > { %947 = vmatprep.subr.mxu0 %v1228_v5 }
 0x178   : > { %948 = vmatpush3.msra.mxu0 %v667_v21  ;;  %v665_v10 = vld [vmem:[#allocation2] sm:$0x1] }
 0x179   : > { %949 = vmatprep.subr.mxu0 %v1228_v5 }
 0x17a   : > { %950 = vmatpush3.msra.mxu0 %v666_v8 }
 0x17b   : > { %952 = vmatmul.mubr.msk.f32.vlgmr.msra.gmra.mxu0 %vm671_vm6, %v665_v10 }
 0x23b   : > { %v741_v23 = vpop.f32.mrf.mxu0 }
 0x23c   : > { %v742_v24 = vadd.f32 %v741_v23, %v670_v22 }
 0x23d   : > { %v953_v25 = vpop.f32.mrf.mxu0 }
 0x23e   : > { %v745_v26 = vmax.f32 %v742_v24, 0.0 }
 0x240   : > { %957 = vmatmul.mubr.msk.f32.vlgmr.msra.gmra.mxu1 %vm748_vm8, %v745_v26 }
 0x300   : > { %v822_v27 = vpop.f32.mrf.mxu1 }
 0x301   : > { %v823_v28 = vadd.f32 %v822_v27, %v747_v20 }
 0x302   : > { %v958_v29 = vpop.f32.mrf.mxu1 }
 0x303   : > { %826 = vst.msk [vmem:[%s1386_s6] sm:$0x1] %vm659_vm4, %v823_v28 }
 0x304 PF: > { %s933_s17 = sshll.u32 %s1207_s25, 4  ;;  %s1587_s9 = sld [smem:[#allocation14_spill]] }
 0x305   : > { %s840_s24 = sshll.u32 %s1386_s6, 4  ;;  %s828_s5 = scalar_lea.sflag [#allocation5], %s255_s7  ;;  %s841_s24 = int_to_ptr.vmem [resolvable:$true] %s840_s24 }
 0x306   : > { %s1099_s10 = scalar_lea.vmem %s841_s24, 16  ;;  %s1230_s15 = smov [#allocation6]  }
 0x307   : > { %p1100_p6 = scmp.ne.s32.totalorder %s841_s24, %s1099_s10  ;;  %s1103_s29 = sshll.u32 %s1230_s15, 4  ;;  %s1104_s29 = int_to_ptr.vmem [resolvable:$false] %s1103_s29 }
 0x308   : > { %s1105_s14 = scalar_lea.vmem %s1104_s29, 32  ;;  %p1106_p10 = scmp.lt.s32.totalorder %s841_s24, %s1104_s29 }
 0x309   : > { %p1101_p8 = pnand %p1100_p6, %p1343_p12  ;;  %p1107_p11 = scmp.lt.s32.totalorder %s1105_s14, %s1099_s10 }
 0x30a   : > { %s838_s13 = scalar_lea.hbm %s1587_s9, %s933_s17 }
 0x30b   : > { %p1102_p9 = pneg %p1101_p8  ;;  %p1108_p13 = por %p1107_p11, %p1106_p10 }
 0x30d   : > { %p1109_p0 = pnand %p1108_p13, %p1102_p9 }
 0x30f   : > { %1112 = shalt.err (!%p1109_p0)
}
 0x310   : > { %s1113_s25 = scalar_lea.hbm %s838_s13, 16  ;;  %s1117_s23 = scalar_lea.hbm %s1587_s9, 32 }
 0x311   : > { %p1114_p3 = scmp.ne.s32.totalorder %s838_s13, %s1113_s25  ;;  %p1118_p4 = scmp.lt.s32.totalorder %s838_s13, %s1587_s9 }
 0x312   : > { %p1119_p7 = scmp.lt.s32.totalorder %s1117_s23, %s1113_s25 }
 0x313   : > { %p1115_p1 = pnand %p1114_p3, %p1343_p12 }
 0x314   : > { %p1120_p6 = por %p1119_p7, %p1118_p4 }
 0x315   : > { %p1116_p5 = pneg %p1115_p1 }
 0x317   : > { %p1121_p8 = pnand %p1120_p6, %p1116_p5 }
 0x319   : > { %1124 = shalt.err (!%p1121_p8)
}
 0x31a   : > { %961 = dma.vmem_to_hbm [thread:$0]  (%p1343_p12), %s841_s24, 16, %s838_s13, %s828_s5  }
 0x31b PF: > { %p972_p9 = scmp.ge.s32.totalorder %s1219_s28, 2  ;;  %s852_s8 = sand.u32 1, %s1179_s18  }
 0x31c   : > { %s853_s30 = scalar_lea.sflag [#allocation5], %s852_s8 }
 0x31d   : > { %p968_p10 = pnand %p972_p9, %p1356_p2 }
 0x31f   : > { %p969_p11 = pneg %p968_p10 }
 0x321   : > { %1174 = dma.done.wait (%p969_p11), %s853_s30, 16  }
 0x322   : > { %1176 = vsyncadd (%p969_p11), %s853_s30, 4294967280  ;;  %s21_s28 = sadd.s32 1, %s1219_s28   ;;  %s1588_s12 = sld [smem:[#allocation9_spill]] }
 0x323   : > { %p18_p13 = scmp.ge.s32.totalorder %s21_s28, 6   ;;  %s1589_s23 = sld [smem:[#allocation13_spill]] }
 0x324   : > { %s1590_s13 = sld [smem:[#allocation10_spill]]  ;;  %s1592_s18 = smov %s1183_s19 }
 0x325   : > { %s1591_s5 = sld [smem:[#allocation11_spill]]  ;;  %s1593_s19 = smov %s1187_s20 }
 0x326   : > { %s1594_s20 = smov %s1348_s16  ;;  %s1595_s21 = smov %s1195_s22 }
 0x327   : > { %s1597_s24 = smov %s1211_s26  ;;  %s1598_s25 = smov %s1215_s27 }
 0x328   : > { %s1596_s22 = smov %s1588_s12  ;;  %20 = sbr.rel (!%p18_p13) target bundleno = 11 (0xb), region = 93 }
 0x32a   : > { %s1599_s26 = smov %s1590_s13 }
 0x32b   : > { %s1600_s27 = smov %s1591_s5 }
 0x32d   :  { %857 = vsyncpa [#allocation4], 1 }
 0x32e   :  { %859 = vsyncpa [#allocation4 + $0x1], 1 }
 0x32f   :  { %860 = vsyncpa [#allocation5], 1 }
 0x330   :  { %862 = vsyncpa [#allocation5 + $0x1], 1 }

</bundles_post_ra>
